<compile_context>
chip_gen: v7x
topology: tpu7x:2x2x1
jax: 0.10.0
libtpu: 0.0.40
codegen_flags: <defaults>
</compile_context>

<pallas_src>
import functools

import jax
import jax.numpy as jnp
from jax import lax
from jax.experimental import pallas as pl
from jax.experimental.pallas import tpu as pltpu

EPS = 1e-5
H1, H2 = 32, 16          # hidden widths of the projector


def _round_up(v, m):
    return (v + m - 1) // m * m


def _lanes(c):           # VMEM footprint estimate: last dim padded to 128 lanes
    return _round_up(c, 128)


def _vmem_capacity():
    try:
        return int(pltpu.get_tpu_info().vmem_capacity_bytes)
    except Exception:
        return 64 << 20   # conservative (v7x physical); safe on all generations


# --------------------------------------------------------------------------------------
# Shared in-kernel helpers
# --------------------------------------------------------------------------------------
def _fold_bn(sum_ref, sq_ref, g_ref, be_ref, s_ref, t_ref, n):
    """Fold full-batch sum/sumsq + affine params into per-feature scale/shift."""
    inv_n = 1.0 / n
    mu = sum_ref[...] * inv_n
    var = jnp.maximum(sq_ref[...] * inv_n - mu * mu, 0.0)   # clamp cancellation
    sc = g_ref[...] * lax.rsqrt(var + EPS)
    s_ref[...] = sc
    t_ref[...] = be_ref[...] - mu * sc


def _accum_stats(h, sum_ref, sq_ref, i, last, row0, n_actual, has_rem):
    """Accumulate sum / sumsq of h; only the last tile builds the row-validity mask."""
    if has_rem:
        @pl.when(i < last)
        def _():
            sum_ref[...] += jnp.sum(h, axis=0, keepdims=True)
            sq_ref[...] += jnp.sum(h * h, axis=0, keepdims=True)

        @pl.when(i == last)
        def _():
            rows = row0 + lax.broadcasted_iota(jnp.int32, (h.shape[0], 1), 0)
            hm = jnp.where(rows < n_actual, h, 0.0)          # select: NaN-safe masking
            sum_ref[...] += jnp.sum(hm, axis=0, keepdims=True)
            sq_ref[...] += jnp.sum(hm * hm, axis=0, keepdims=True)
    else:
        sum_ref[...] += jnp.sum(h, axis=0, keepdims=True)
        sq_ref[...] += jnp.sum(h * h, axis=0, keepdims=True)


# --------------------------------------------------------------------------------------
# Single-block fused kernel (small batches: whole batch resident in VMEM, one launch).
# --------------------------------------------------------------------------------------
def _fused_kernel(x_ref, w1_ref, g1_ref, be1_ref,
                  w2_ref, g2_ref, be2_ref, w3_ref, b3_ref, o_ref):
    x = x_ref[...]

    # Linear(input_dim,32) [+b1 cancels under training-mode BN] + BN + ReLU
    h = jnp.dot(x, w1_ref[...], preferred_element_type=jnp.float32)
    mu = jnp.mean(h, axis=0, keepdims=True)
    var = jnp.maximum(jnp.mean(h * h, axis=0, keepdims=True) - mu * mu, 0.0)
    scale = g1_ref[...] * lax.rsqrt(var + EPS)
    shift = be1_ref[...] - mu * scale
    h = jnp.maximum(h * scale + shift, 0.0)

    # Linear(32,16) [+b2 cancels] + BN + ReLU
    h = jnp.dot(h, w2_ref[...], preferred_element_type=jnp.float32)
    mu = jnp.mean(h, axis=0, keepdims=True)
    var = jnp.maximum(jnp.mean(h * h, axis=0, keepdims=True) - mu * mu, 0.0)
    scale = g2_ref[...] * lax.rsqrt(var + EPS)
    shift = be2_ref[...] - mu * scale
    h = jnp.maximum(h * scale + shift, 0.0)

    # Linear(16, feature_dim)
    o_ref[...] = (jnp.dot(h, w3_ref[...], preferred_element_type=jnp.float32)
                  + b3_ref[...]).astype(o_ref.dtype)


# --------------------------------------------------------------------------------------
# Large-batch path: single multi-phase kernel, grid=(3, num_tiles).
#   phase 0: h1 = x@W1      -> VMEM cache, accumulate BN1 stats, fold scale1/shift1
#   phase 1: h2 = relu(bn1)@W2 from cached h1 -> VMEM cache, BN2 stats, fold scale2/shift2
#   phase 2: out = relu(bn2)@W3 + b3 from cached h2 -> HBM
# x is read from HBM once (phase 0 only); weights stay VMEM-resident across all phases.
# --------------------------------------------------------------------------------------
def _multiphase_kernel(x_ref, w1_ref, g1_ref, be1_ref, w2_ref, g2_ref, be2_ref,
                       w3_ref, b3_ref, o_ref,
                       h1c, h2c, sum1, sq1, sum2, sq2, s1, t1, s2, t2,
                       *, tile_n, n_actual, has_rem):
    p = pl.program_id(0)
    i = pl.program_id(1)
    last = pl.num_programs(1) - 1
    row0 = i * tile_n

    @pl.when(p == 0)
    def _phase0():
        @pl.when(i == 0)
        def _():
            sum1[...] = jnp.zeros_like(sum1)
            sq1[...] = jnp.zeros_like(sq1)

        h1 = jnp.dot(x_ref[...], w1_ref[...], preferred_element_type=jnp.float32)
        h1c[i] = h1
        _accum_stats(h1, sum1, sq1, i, last, row0, n_actual, has_rem)

        @pl.when(i == last)
        def _():
            _fold_bn(sum1, sq1, g1_ref, be1_ref, s1, t1, n_actual)

    @pl.when(p == 1)
    def _phase1():
        @pl.when(i == 0)
        def _():
            sum2[...] = jnp.zeros_like(sum2)
            sq2[...] = jnp.zeros_like(sq2)

        a1 = jnp.maximum(h1c[i] * s1[...] + t1[...], 0.0)
        h2 = jnp.dot(a1, w2_ref[...], preferred_element_type=jnp.float32)
        h2c[i] = h2
        _accum_stats(h2, sum2, sq2, i, last, row0, n_actual, has_rem)

        @pl.when(i == last)
        def _():
            _fold_bn(sum2, sq2, g2_ref, be2_ref, s2, t2, n_actual)

    @pl.when(p == 2)
    def _phase2():
        a2 = jnp.maximum(h2c[i] * s2[...] + t2[...], 0.0)
        o_ref[...] = (jnp.dot(a2, w3_ref[...], preferred_element_type=jnp.float32)
                      + b3_ref[...]).astype(o_ref.dtype)


# --------------------------------------------------------------------------------------
# Wrapper
# --------------------------------------------------------------------------------------
def network_forward(x, params, *, tile_n=None, single_block_max=None):
    """x: (N, input_dim).  params: dict from init_params (linear weights stored (in,out))."""
    n, d = x.shape
    feat = params["w3"].shape[1]

    budget = int(_vmem_capacity() * 0.9)

    # ---- small batch: single launch, whole batch VMEM-resident (overhead-bound regime)
    if single_block_max is None:
        per_row = (_lanes(d) + 2 * (_lanes(H1) + _lanes(H2) + _lanes(feat))) * 4
        single_block_max = max(8, min(budget // per_row, 32768))

    vmem = pl.BlockSpec(memory_space=pltpu.MemorySpace.VMEM)

    if n <= single_block_max:
        return pl.pallas_call(
            _fused_kernel,
            out_shape=jax.ShapeDtypeStruct((n, feat), jnp.float32),
            in_specs=[vmem] * 9,
            out_specs=vmem,
            compiler_params=pltpu.CompilerParams(vmem_limit_bytes=budget),
        )(x, params["w1"], params["g1"], params["be1"],
          params["w2"], params["g2"], params["be2"], params["w3"], params["b3"])

    # ---- large batch: single multi-phase call, x read once, h1/h2 cached in VMEM ----
    if tile_n is None:
        tile_n = max(512, min(8192, (8 << 20) // (8 * _lanes(d))))   # ~8MiB dbl-buffered x tile
    tile_n = max(8, (min(tile_n, _round_up(n, 8)) // 8) * 8)
    num_tiles = (n + tile_n - 1) // tile_n
    has_rem = (n % tile_n) != 0

    cache_bytes = num_tiles * tile_n * (_lanes(H1) + _lanes(H2)) * 4
    step_bytes = tile_n * (2 * _lanes(d) + 2 * _lanes(feat)
                           + 2 * (_lanes(H1) + _lanes(H2))) * 4
    if cache_bytes + step_bytes + (4 << 20) > budget:
        # TODO(synk): for batches whose h1/h2 activation cache exceeds VMEM, spill the
        # cache to an HBM scratch (3-call variant) instead of failing.
        raise NotImplementedError("batch too large for the VMEM-cached multi-phase path")

    kernel = functools.partial(_multiphase_kernel, tile_n=tile_n, n_actual=n,
                               has_rem=has_rem)

    def rep(shape):   # parameters: single block, VMEM-resident across all grid steps
        return pl.BlockSpec(shape, lambda p, i: (0, 0))

    out = pl.pallas_call(
        kernel,
        out_shape=jax.ShapeDtypeStruct((n, feat), jnp.float32),
        grid=(3, num_tiles),
        in_specs=[
            # x: tiled in phase 0 only; pinned to the last block afterwards (no re-DMA).
            pl.BlockSpec((tile_n, d),
                         lambda p, i: (jnp.where(p == 0, i, num_tiles - 1), 0)),
            rep((d, H1)), rep((1, H1)), rep((1, H1)),
            rep((H1, H2)), rep((1, H2)), rep((1, H2)),
            rep((H2, feat)), rep((1, feat)),
        ],
        # output only advances (and is written back) during phase 2.
        out_specs=pl.BlockSpec((tile_n, feat),
                               lambda p, i: (jnp.where(p == 2, i, 0), 0)),
        scratch_shapes=[
            pltpu.VMEM((num_tiles, tile_n, H1), jnp.float32),   # h1 cache
            pltpu.VMEM((num_tiles, tile_n, H2), jnp.float32),   # h2 cache
            pltpu.VMEM((1, H1), jnp.float32), pltpu.VMEM((1, H1), jnp.float32),  # sum1/sq1
            pltpu.VMEM((1, H2), jnp.float32), pltpu.VMEM((1, H2), jnp.float32),  # sum2/sq2
            pltpu.VMEM((1, H1), jnp.float32), pltpu.VMEM((1, H1), jnp.float32),  # scale1/shift1
            pltpu.VMEM((1, H2), jnp.float32), pltpu.VMEM((1, H2), jnp.float32),  # scale2/shift2
        ],
        compiler_params=pltpu.CompilerParams(
            dimension_semantics=("arbitrary", "arbitrary"),
            vmem_limit_bytes=budget),
        # TODO(synk): on v7x, shard phase 2 across the 2 TensorCores (core_parallel axis
        # with per-core partial stats); single-TC chips (v5e/v6e) are unaffected.
    )(x, params["w1"], params["g1"], params["be1"],
      params["w2"], params["g2"], params["be2"], params["w3"], params["b3"])
    return out


# --------------------------------------------------------------------------------------
# Parameters & reference
# --------------------------------------------------------------------------------------
def init_params(key, input_dim, feature_dim):
    """Deterministic synthetic parameters, shapes matching the PyTorch module.
    Linear weights stored transposed (in, out); biases / BN affine params as (1, C)."""
    ks = jax.random.split(key, 10)

    def lin(kw, kb, fin, fout):
        bound = 1.0 / (fin ** 0.5)
        w = jax.random.uniform(kw, (fin, fout), jnp.float32, -bound, bound)
        b = jax.random.uniform(kb, (1, fout), jnp.float32, -bound, bound)
        return w, b

    w1, b1 = lin(ks[0], ks[1], input_dim, H1)
    w2, b2 = lin(ks[2], ks[3], H1, H2)
    w3, b3 = lin(ks[4], ks[5], H2, feature_dim)
    return {
        "w1": w1, "b1": b1,
        "g1": jax.random.uniform(ks[6], (1, H1), jnp.float32, 0.5, 1.5),
        "be1": jax.random.uniform(ks[7], (1, H1), jnp.float32, -0.5, 0.5),
        "w2": w2, "b2": b2,
        "g2": jax.random.uniform(ks[8], (1, H2), jnp.float32, 0.5, 1.5),
        "be2": jax.random.uniform(ks[9], (1, H2), jnp.float32, -0.5, 0.5),
        "w3": w3, "b3": b3,
    }


def network_forward_ref(x, p):
    """Pure-JAX reference of the same forward (training-mode BatchNorm, biases included)."""
    def bn(h, g, b):
        mu = jnp.mean(h, axis=0, keepdims=True)
        var = jnp.mean((h - mu) ** 2, axis=0, keepdims=True)
        return (h - mu) / jnp.sqrt(var + EPS) * g + b

    h = x @ p["w1"] + p["b1"]
    h = jnp.maximum(bn(h, p["g1"], p["be1"]), 0.0)
    h = h @ p["w2"] + p["b2"]
    h = jnp.maximum(bn(h, p["g2"], p["be2"]), 0.0)
    return h @ p["w3"] + p["b3"]


# TODO(synk): nn.BatchNorm1d running_mean/running_var buffer updates are training-side
# state mutation, not part of the forward output, and are not materialized here.

if __name__ == "__main__":
    key = jax.random.PRNGKey(0)
    k_small, k_big, k_p = jax.random.split(key, 3)

    input_dim, feature_dim = 32, 8
    params = init_params(k_p, input_dim, feature_dim)

    # 1) Small batch -> single fused VMEM-resident kernel (overhead-dominated regime).
    x_small = jax.random.normal(k_small, (8, input_dim), jnp.float32)
    out_small = jax.block_until_ready(network_forward(x_small, params))
    ref_small = jax.block_until_ready(network_forward_ref(x_small, params))
    assert out_small.shape == (8, feature_dim)
    assert jnp.allclose(out_small, ref_small, atol=1e-3, rtol=1e-3), "small-batch mismatch"

    # 2) Larger batch -> single multi-phase call; 600 = 2*256 + 88 exercises the masked
    #    remainder tile and full-batch BN statistics accumulated across tiles.
    x_big = jax.random.normal(k_big, (600, input_dim), jnp.float32)
    out_big = jax.block_until_ready(
        network_forward(x_big, params, tile_n=256, single_block_max=256))
    ref_big = jax.block_until_ready(network_forward_ref(x_big, params))
    assert out_big.shape == (600, feature_dim)
    assert jnp.allclose(out_big, ref_big, atol=1e-3, rtol=1e-3), "multi-phase mismatch"

    print("KERNEL_OK")
</pallas_src>

<mosaic_0001>
module attributes {stable_mosaic.version = 11 : i64} {
  func.func @_fused_kernel(%arg0: memref<8x32xf32, #tpu.memory_space<vmem>>, %arg1: memref<32x32xf32, #tpu.memory_space<vmem>>, %arg2: memref<1x32xf32, #tpu.memory_space<vmem>>, %arg3: memref<1x32xf32, #tpu.memory_space<vmem>>, %arg4: memref<32x16xf32, #tpu.memory_space<vmem>>, %arg5: memref<1x16xf32, #tpu.memory_space<vmem>>, %arg6: memref<1x16xf32, #tpu.memory_space<vmem>>, %arg7: memref<16x8xf32, #tpu.memory_space<vmem>>, %arg8: memref<1x8xf32, #tpu.memory_space<vmem>>, %arg9: memref<8x8xf32, #tpu.memory_space<vmem>>) attributes {dimension_semantics = [], scalar_prefetch = 0 : i64, scratch_operands = 0 : i64, tpu.core_type = #tpu.core_type<tc>} {
    %c0 = arith.constant 0 : index
    %c0_0 = arith.constant 0 : index
    %0 = vector.load %arg0[%c0, %c0_0] : memref<8x32xf32, #tpu.memory_space<vmem>>, vector<8x32xf32>
    %c0_1 = arith.constant 0 : index
    %c0_2 = arith.constant 0 : index
    %1 = vector.load %arg1[%c0_1, %c0_2] : memref<32x32xf32, #tpu.memory_space<vmem>>, vector<32x32xf32>
    %cst = arith.constant dense<0.000000e+00> : vector<8x32xf32>
    %2 = tpu.matmul %0, %1, %cst {dimension_numbers = #tpu.dot_dimension_numbers<[1], [0], [0], [1], [0, 0, 1, 1], [], []>} : vector<8x32xf32>, vector<32x32xf32>, vector<8x32xf32> -> vector<8x32xf32>
    %cst_3 = arith.constant dense<0.000000e+00> : vector<32xf32>
    %3 = vector.multi_reduction <add>, %2, %cst_3 [0] : vector<8x32xf32> to vector<32xf32>
    %4 = vector.shape_cast %3 : vector<32xf32> to vector<1x32xf32>
    %cst_4 = arith.constant 8.000000e+00 : f32
    %5 = vector.broadcast %cst_4 : f32 to vector<1x32xf32>
    %6 = arith.divf %4, %5 : vector<1x32xf32>
    %7 = arith.mulf %2, %2 : vector<8x32xf32>
    %cst_5 = arith.constant dense<0.000000e+00> : vector<32xf32>
    %8 = vector.multi_reduction <add>, %7, %cst_5 [0] : vector<8x32xf32> to vector<32xf32>
    %9 = vector.shape_cast %8 : vector<32xf32> to vector<1x32xf32>
    %cst_6 = arith.constant 8.000000e+00 : f32
    %10 = vector.broadcast %cst_6 : f32 to vector<1x32xf32>
    %11 = arith.divf %9, %10 : vector<1x32xf32>
    %12 = arith.mulf %6, %6 : vector<1x32xf32>
    %13 = arith.subf %11, %12 : vector<1x32xf32>
    %cst_7 = arith.constant 0.000000e+00 : f32
    %14 = vector.broadcast %cst_7 : f32 to vector<1x32xf32>
    %15 = arith.maximumf %13, %14 : vector<1x32xf32>
    %c0_8 = arith.constant 0 : index
    %c0_9 = arith.constant 0 : index
    %16 = vector.load %arg2[%c0_8, %c0_9] : memref<1x32xf32, #tpu.memory_space<vmem>>, vector<1x32xf32>
    %cst_10 = arith.constant 9.99999974E-6 : f32
    %17 = vector.broadcast %cst_10 : f32 to vector<1x32xf32>
    %18 = arith.addf %15, %17 : vector<1x32xf32>
    %19 = math.rsqrt %18 : vector<1x32xf32>
    %20 = arith.mulf %16, %19 : vector<1x32xf32>
    %c0_11 = arith.constant 0 : index
    %c0_12 = arith.constant 0 : index
    %21 = vector.load %arg3[%c0_11, %c0_12] : memref<1x32xf32, #tpu.memory_space<vmem>>, vector<1x32xf32>
    %22 = arith.mulf %6, %20 : vector<1x32xf32>
    %23 = arith.subf %21, %22 : vector<1x32xf32>
    %24 = vector.broadcast %20 : vector<1x32xf32> to vector<8x32xf32>
    %25 = arith.mulf %2, %24 : vector<8x32xf32>
    %26 = vector.broadcast %23 : vector<1x32xf32> to vector<8x32xf32>
    %27 = arith.addf %25, %26 : vector<8x32xf32>
    %cst_13 = arith.constant 0.000000e+00 : f32
    %28 = vector.broadcast %cst_13 : f32 to vector<8x32xf32>
    %29 = arith.maximumf %27, %28 : vector<8x32xf32>
    %c0_14 = arith.constant 0 : index
    %c0_15 = arith.constant 0 : index
    %30 = vector.load %arg4[%c0_14, %c0_15] : memref<32x16xf32, #tpu.memory_space<vmem>>, vector<32x16xf32>
    %cst_16 = arith.constant dense<0.000000e+00> : vector<8x16xf32>
    %31 = tpu.matmul %29, %30, %cst_16 {dimension_numbers = #tpu.dot_dimension_numbers<[1], [0], [0], [1], [0, 0, 1, 1], [], []>} : vector<8x32xf32>, vector<32x16xf32>, vector<8x16xf32> -> vector<8x16xf32>
    %cst_17 = arith.constant dense<0.000000e+00> : vector<16xf32>
    %32 = vector.multi_reduction <add>, %31, %cst_17 [0] : vector<8x16xf32> to vector<16xf32>
    %33 = vector.shape_cast %32 : vector<16xf32> to vector<1x16xf32>
    %cst_18 = arith.constant 8.000000e+00 : f32
    %34 = vector.broadcast %cst_18 : f32 to vector<1x16xf32>
    %35 = arith.divf %33, %34 : vector<1x16xf32>
    %36 = arith.mulf %31, %31 : vector<8x16xf32>
    %cst_19 = arith.constant dense<0.000000e+00> : vector<16xf32>
    %37 = vector.multi_reduction <add>, %36, %cst_19 [0] : vector<8x16xf32> to vector<16xf32>
    %38 = vector.shape_cast %37 : vector<16xf32> to vector<1x16xf32>
    %cst_20 = arith.constant 8.000000e+00 : f32
    %39 = vector.broadcast %cst_20 : f32 to vector<1x16xf32>
    %40 = arith.divf %38, %39 : vector<1x16xf32>
    %41 = arith.mulf %35, %35 : vector<1x16xf32>
    %42 = arith.subf %40, %41 : vector<1x16xf32>
    %cst_21 = arith.constant 0.000000e+00 : f32
    %43 = vector.broadcast %cst_21 : f32 to vector<1x16xf32>
    %44 = arith.maximumf %42, %43 : vector<1x16xf32>
    %c0_22 = arith.constant 0 : index
    %c0_23 = arith.constant 0 : index
    %45 = vector.load %arg5[%c0_22, %c0_23] : memref<1x16xf32, #tpu.memory_space<vmem>>, vector<1x16xf32>
    %cst_24 = arith.constant 9.99999974E-6 : f32
    %46 = vector.broadcast %cst_24 : f32 to vector<1x16xf32>
    %47 = arith.addf %44, %46 : vector<1x16xf32>
    %48 = math.rsqrt %47 : vector<1x16xf32>
    %49 = arith.mulf %45, %48 : vector<1x16xf32>
    %c0_25 = arith.constant 0 : index
    %c0_26 = arith.constant 0 : index
    %50 = vector.load %arg6[%c0_25, %c0_26] : memref<1x16xf32, #tpu.memory_space<vmem>>, vector<1x16xf32>
    %51 = arith.mulf %35, %49 : vector<1x16xf32>
    %52 = arith.subf %50, %51 : vector<1x16xf32>
    %53 = vector.broadcast %49 : vector<1x16xf32> to vector<8x16xf32>
    %54 = arith.mulf %31, %53 : vector<8x16xf32>
    %55 = vector.broadcast %52 : vector<1x16xf32> to vector<8x16xf32>
    %56 = arith.addf %54, %55 : vector<8x16xf32>
    %cst_27 = arith.constant 0.000000e+00 : f32
    %57 = vector.broadcast %cst_27 : f32 to vector<8x16xf32>
    %58 = arith.maximumf %56, %57 : vector<8x16xf32>
    %c0_28 = arith.constant 0 : index
    %c0_29 = arith.constant 0 : index
    %59 = vector.load %arg7[%c0_28, %c0_29] : memref<16x8xf32, #tpu.memory_space<vmem>>, vector<16x8xf32>
    %cst_30 = arith.constant dense<0.000000e+00> : vector<8x8xf32>
    %60 = tpu.matmul %58, %59, %cst_30 {dimension_numbers = #tpu.dot_dimension_numbers<[1], [0], [0], [1], [0, 0, 1, 1], [], []>} : vector<8x16xf32>, vector<16x8xf32>, vector<8x8xf32> -> vector<8x8xf32>
    %c0_31 = arith.constant 0 : index
    %c0_32 = arith.constant 0 : index
    %61 = vector.load %arg8[%c0_31, %c0_32] : memref<1x8xf32, #tpu.memory_space<vmem>>, vector<1x8xf32>
    %62 = vector.broadcast %61 : vector<1x8xf32> to vector<8x8xf32>
    %63 = arith.addf %60, %62 : vector<8x8xf32>
    %c0_33 = arith.constant 0 : index
    %c0_34 = arith.constant 0 : index
    %64 = vector.load %arg9[%c0_33, %c0_34] : memref<8x8xf32, #tpu.memory_space<vmem>>, vector<8x8xf32>
    tpu.vector_store %arg9[%c0_33, %c0_34], %63 {strides = array<i32>} : memref<8x8xf32, #tpu.memory_space<vmem>>, vector<8x8xf32>,
    return
  }
}

</mosaic_0001>

<bundles_post_ra>
// kernel: tpu_custom_call.1
= control target key start
LH: loop header
LB: loop body
LE: loop exit
PB: predicated region body
PF: predicated region fallthrough
CT: control target
= control target key end

     0   :  { %v466_v3 = vmov 0.0|0.0   ;;  %vm467_vm0 = vmmov 0   ;;  %v468_v6 = vmov 0.0   ;;  %s587_s0 = inlined_call_operand.vmem [shape: f32[8,32], index: 0, kind: input, shape index: {}]   ;;  %s588_s1 = inlined_call_operand.vmem [shape: f32[32,32], index: 1, kind: input, shape index: {}]   ;;  %s589_s2 = inlined_call_operand.vmem [shape: f32[1,32], index: 2, kind: input, shape index: {}]   ;;  %s590_s3 = inlined_call_operand.vmem [shape: f32[1,32], index: 3, kind: input, shape index: {}]   ;;  %s591_s4 = inlined_call_operand.vmem [shape: f32[32,16], index: 4, kind: input, shape index: {}]   ;;  %s592_s5 = inlined_call_operand.vmem [shape: f32[1,16], index: 5, kind: input, shape index: {}]   ;;  %s593_s6 = inlined_call_operand.vmem [shape: f32[1,16], index: 6, kind: input, shape index: {}]   ;;  %s594_s7 = inlined_call_operand.vmem [shape: f32[16,8], index: 7, kind: input, shape index: {}]   ;;  %s595_s8 = inlined_call_operand.vmem [shape: f32[1,8], index: 8, kind: input, shape index: {}]   ;;  %s596_s9 = inlined_call_operand.hbm [shape: f32[8,8], index: 9, kind: output, shape index: {}]  }
   0x1   :  { %v34_v0 = vld [vmem:[%s588_s1] sm:$0xff]  ;;  %v35_v1 = vld [vmem:[%s588_s1 + $0x8] sm:$0xff]  ;;  %v36_v2 = vld [vmem:[%s588_s1 + $0x10] sm:$0xff]  ;;  %419 = vmatprep.subr.bf16.mxu0 %v466_v3  ;;  %398 = vmatprep.mubr.msk.f32.mxu0 %vm467_vm0, %v468_v6 }
   0x2   :  { %v420_v4 = vpack.c.bf16 %v35_v1, %v34_v0  ;;  %v37_v5 = vld [vmem:[%s588_s1 + $0x18] sm:$0xff] }
   0x3   :  { %14 = vsyncpa [#allocation3], 0  ;;  %425 = vmatprep.subr.bf16.mxu1 %v466_v3  ;;  %409 = vmatprep.mubr.msk.f32.mxu1 %vm467_vm0, %v468_v6  ;;  %v423_v7 = vpack.c.bf16 %v37_v5, %v36_v2  ;;  %v33_v8 = vld [vmem:[%s587_s0] sm:$0xff]  ;;  %vm38_vm1 = vcmask 261120   ;;  %v156_v10 = vld [vmem:[%s591_s4 + $0x8] sm:$0xff]  ;;  %v141_v38 = vlaneseq  ;;  %vm232_vm2 = vcmask 130048  }
   0x4   :  { %421 = vmatpush3.bf16.msra.mxu0 %v420_v4  ;;  %v155_v9 = vld [vmem:[%s591_s4] sm:$0xff]  ;;  %v157_v12 = vld [vmem:[%s591_s4 + $0x10] sm:$0xff]  ;;  %v158_v13 = vld [vmem:[%s591_s4 + $0x18] sm:$0xff]  ;;  %vm357_vm3 = vcmask 64512  }
   0x5   :  { %422 = vmatprep.subr.bf16.mxu0 %v466_v3  ;;  %v426_v11 = vpack.c.bf16 %v156_v10, %v155_v9  ;;  %v429_v14 = vpack.c.bf16 %v158_v13, %v157_v12  ;;  %v142_v39 = vshrl.u32 %v141_v38, 7  ;;  %v133_v40 = vld [vmem:[%s589_s2] sm:$0x1]  ;;  %v276_v53 = vld [vmem:[%s594_s7 + $0x8] sm:$0xff] }
   0x6   :  { %v137_v44 = vld [vmem:[%s590_s3] sm:$0x1] }
   0x7   :  { %427 = vmatpush3.bf16.msra.mxu1 %v426_v11  ;;  %v143_v41 = vsub.s32 0, %v142_v39  ;;  %v275_v52 = vld [vmem:[%s594_s7] sm:$0xff] }
   0x8   :  { %424 = vmatpush3.bf16.msra.mxu0 %v423_v7  ;;  %428 = vmatprep.subr.bf16.mxu1 %v466_v3  ;;  %v432_v54 = vpack.c.bf16 %v276_v53, %v275_v52 }
   0x9   :  { %431 = vmatprep.subr.bf16.mxu0 %v466_v3 }
   0xb   :  { %399 = vmatmul.mubr.msk.f32.vlgmr.msra.gmra.mrb[0].mxu0 %vm38_vm1, %v33_v8  ;;  %430 = vmatpush3.bf16.msra.mxu1 %v429_v14  ;;  %v253_v14 = vld [vmem:[%s592_s5] sm:$0x1]  ;;  %s469_s5 = smov [#allocation2]  }
   0xc   :  { %416 = vmatprep.mubr.msk.f32.mxu0 %vm467_vm0, %v468_v6  ;;  %433 = vmatpush3.bf16.msra.mxu0 %v432_v54  ;;  %s365_s14 = sshll.u32 %s469_s5, 4  ;;  %s366_s14 = int_to_ptr.vmem [resolvable:$true] %s365_s14 }
   0xd   :  { %p447_p1 = scmp.lt.s32.totalorder %s366_s14, %s366_s14 }
  0xde   :  { %v108_v15 = vpop.f32.mrb[0].mxu0 }
  0xdf   :  { %v112_v16 = vsel %vm38_vm1, %v108_v15, 0.0  ;;  %v121_v17 = vmul.f32 %v108_v15, %v108_v15  ;;  %v400_v18 = vpop.f32.mrb[1].mxu0 }
  0xe0   :  { %v113_v19 = vrot.slane %v112_v16, 4 }
  0xe1   :  { %v122_v20 = vsel %vm38_vm1, %v121_v17, 0.0  ;;  %v257_v17 = vld [vmem:[%s593_s6] sm:$0x1]  ;;  %s442_s6 = scalar_lea.vmem %s366_s14, 128 }
  0xe2   :  { %v114_v21 = vadd.f32 %v113_v19, %v112_v16  ;;  %v123_v22 = vrot.slane %v122_v20, 4  ;;  %p443_p0 = scmp.ne.s32.totalorder %s366_s14, %s442_s6  ;;  %p448_p2 = scmp.lt.s32.totalorder %s442_s6, %s442_s6 }
  0xe4   :  { %v115_v23 = vrot.slane %v114_v21, 2  ;;  %v124_v24 = vadd.f32 %v123_v22, %v122_v20  ;;  %p449_p3 = por %p448_p2, %p447_p1 }
  0xe6   :  { %v116_v25 = vadd.f32 %v115_v23, %v114_v21  ;;  %v125_v26 = vrot.slane %v124_v24, 2  ;;  %p450_p4 = pnand %p449_p3, %p443_p0 }
  0xe8   :  { %v117_v27 = vrot.slane %v116_v25, 1  ;;  %v126_v28 = vadd.f32 %v125_v26, %v124_v24 }
  0xea   :  { %v118_v29 = vadd.f32 %v117_v27, %v116_v25  ;;  %v127_v30 = vrot.slane %v126_v28, 1  ;;  %v375_v25 = vld [vmem:[%s595_s8] ss:$0 sm:$0xff] }
  0xec   :  { %v120_v31 = vmul.f32 0.125, %v118_v29  ;;  %v128_v32 = vadd.f32 %v127_v30, %v126_v28 }
  0xee   :  { %v129_v33 = vmul.f32 0.125, %v128_v32  ;;  %v130_v34 = vmul.f32 %v120_v31, %v120_v31 }
  0xf0   :  { %v131_v35 = vsub.f32 %v129_v33, %v130_v34 }
  0xf2   :  { %v132_v36 = vmax.f32 %v131_v35, 0.0 }
  0xf4   :  { %v134_v37 = vadd.f32 1e-05, %v132_v36 }
  0xf6   :  { %438 = vrsqrt.f32 %v134_v37 }
 0x100   :  { %v439_v42 = vpop.eup %438 }
 0x101   :  { %v136_v43 = vmul.f32 %v439_v42, %v133_v40 }
 0x103   :  { %v138_v45 = vmul.f32 %v136_v43, %v120_v31  ;;  %v144_v46 = vrot.slane %v136_v43, %v143_v41 }
 0x105   :  { %v139_v47 = vsub.f32 %v137_v44, %v138_v45  ;;  %v146_v48 = vmul.f32 %v144_v46, %v108_v15 }
 0x107   :  { %v151_v49 = vrot.slane %v139_v47, %v143_v41 }
 0x109   :  { %v153_v50 = vadd.f32 %v151_v49, %v146_v48 }
 0x10b   :  { %v154_v51 = vmax.f32 %v153_v50, 0.0 }
 0x10d   :  { %410 = vmatmul.mubr.msk.f32.vlgmr.msra.gmra.mrb[0].mxu1 %vm38_vm1, %v154_v51 }
 0x1e0   :  { %v228_v55 = vpop.f32.mrb[0].mxu1 }
 0x1e1   :  { %v233_v56 = vsel %vm232_vm2, %v228_v55, 0.0  ;;  %v241_v57 = vmul.f32 %v228_v55, %v228_v55  ;;  %v411_v58 = vpop.f32.mrb[1].mxu1 }
 0x1e2   :  { %v234_v59 = vrot.slane %v233_v56, 4 }
 0x1e3   :  { %v242_v60 = vsel %vm232_vm2, %v241_v57, 0.0 }
 0x1e4   :  { %v235_v61 = vadd.f32 %v234_v59, %v233_v56  ;;  %v243_v62 = vrot.slane %v242_v60, 4 }
 0x1e6   :  { %v236_v63 = vrot.slane %v235_v61, 2  ;;  %v244_v0 = vadd.f32 %v243_v62, %v242_v60 }
 0x1e8   :  { %v237_v1 = vadd.f32 %v236_v63, %v235_v61  ;;  %v245_v2 = vrot.slane %v244_v0, 2 }
 0x1ea   :  { %v238_v3 = vrot.slane %v237_v1, 1  ;;  %v246_v4 = vadd.f32 %v245_v2, %v244_v0 }
 0x1ec   :  { %v239_v5 = vadd.f32 %v238_v3, %v237_v1  ;;  %v247_v6 = vrot.slane %v246_v4, 1 }
 0x1ee   :  { %v240_v7 = vmul.f32 0.125, %v239_v5  ;;  %v248_v8 = vadd.f32 %v247_v6, %v246_v4 }
 0x1f0   :  { %v249_v9 = vmul.f32 0.125, %v248_v8  ;;  %v250_v10 = vmul.f32 %v240_v7, %v240_v7 }
 0x1f2   :  { %v251_v11 = vsub.f32 %v249_v9, %v250_v10 }
 0x1f4   :  { %v252_v12 = vmax.f32 %v251_v11, 0.0 }
 0x1f6   :  { %v254_v13 = vadd.f32 1e-05, %v252_v12 }
 0x1f8   :  { %440 = vrsqrt.f32 %v254_v13 }
 0x202   :  { %v441_v15 = vpop.eup %440 }
 0x203   :  { %v256_v16 = vmul.f32 %v441_v15, %v253_v14 }
 0x205   :  { %v258_v18 = vmul.f32 %v256_v16, %v240_v7  ;;  %v264_v19 = vrot.slane %v256_v16, %v143_v41 }
 0x207   :  { %v259_v20 = vsub.f32 %v257_v17, %v258_v18  ;;  %v266_v21 = vmul.f32 %v264_v19, %v228_v55 }
 0x209   :  { %v271_v22 = vrot.slane %v259_v20, %v143_v41 }
 0x20b   :  { %v273_v23 = vadd.f32 %v271_v22, %v266_v21 }
 0x20d   :  { %v274_v24 = vmax.f32 %v273_v23, 0.0 }
 0x20f   :  { %417 = vmatmul.mubr.msk.f32.vlgmr.msra.gmra.mrb[2].mxu0 %vm232_vm2, %v274_v24 }
 0x2e2   :  { %v353_v26 = vpop.f32.mrb[2].mxu0 }
 0x2e3   :  { %v354_v27 = vadd.f32 %v375_v25, %v353_v26  ;;  %v418_v28 = vpop.f32.mrb[3].mxu0 }
 0x2e5   :  { %358 = vst.msk [vmem:[#allocation2] sm:$0xff] %vm357_vm3, %v354_v27 }
 0x2e6   :  { %453 = shalt.err (!%p450_p4)
}
 0x2e7   :  { %s454_s17 = scalar_lea.hbm %s596_s9, 128 }
 0x2e8   :  { %p455_p5 = scmp.ne.s32.totalorder %s596_s9, %s454_s17  ;;  %p458_p6 = scmp.lt.u32.totalorder %s454_s17, %s596_s9 }
 0x2ea   :  { %p460_p7 = pnand %p458_p6, %p455_p5 }
 0x2ec   :  { %463 = shalt.err (!%p460_p7)
}
 0x2ed   :  { %368 = dma.vmem_to_hbm [thread:$0]  %s366_s14, 128, %s596_s9, [#allocation3]  }
 0x2ee   :  { %464 = dma.done.wait [#allocation3], 128  }
 0x2ef   :  { %465 = vsyncadd [#allocation3], 4294967168 }
 0x2f0   :  { %372 = vsyncpa [#allocation3], 1 }

</bundles_post_ra>
